<compile_context>
chip_gen: v6e
topology: v6e:2x2x1
jax: 0.10.0
libtpu: 0.0.40
codegen_flags: <defaults>
</compile_context>

<pallas_src>
import functools

import jax
import jax.numpy as jnp
from jax import lax
from jax.experimental import pallas as pl
from jax.experimental.pallas import tpu as pltpu


_MAX_TILE_N = 8192  # loose cap; the VMEM budget is the real limiter


def _poly1_ce_kernel(logits_ref, labels_ref, out_ref, *, epsilon, n_total, tile_n):
    """One grid step: (tile_n, C) logits tile -> lane-dense partial-sum block."""
    i = pl.program_id(0)

    x = logits_ref[...].astype(jnp.float32)          # (TN, C)
    lbl = labels_ref[...]                            # (TN, 1) int32

    # Numerically-stable logsumexp.
    m = jnp.max(x, axis=-1, keepdims=True)           # (TN, 1)
    logsumexp = m + jnp.log(jnp.sum(jnp.exp(x - m), axis=-1, keepdims=True))

    # Select the true-class logit via iota compare (no gather, no onehot mul).
    col = lax.broadcasted_iota(jnp.int32, x.shape, 1)
    logit_true = jnp.sum(jnp.where(col == lbl, x, jnp.float32(0.0)),
                         axis=-1, keepdims=True)     # (TN, 1)
    # TODO(synk): no ignore_index / out-of-range label handling (PyTorch would
    #             error or skip; here an out-of-range label yields logit_true=0).

    ce = logsumexp - logit_true                      # (TN, 1)
    pt = jnp.exp(-ce)                                # softmax prob of true class
    poly1 = ce + epsilon * (1.0 - pt)                # (TN, 1)
    # TODO(synk): per-class `weight` rescaling (weight=None in this config).

    # Mask pad rows of the (possibly partial) last tile.  Keep this a SELECT
    # applied after poly1 so NaN/Inf from garbage pad rows become exactly 0.
    row_id = i * tile_n + lax.broadcasted_iota(jnp.int32, poly1.shape, 0)
    poly1 = jnp.where(row_id < n_total, poly1, jnp.float32(0.0))

    partial = jnp.sum(poly1)                         # scalar partial sum
    # Lane-dense unmasked store; reduced outside the kernel.
    out_ref[...] = jnp.broadcast_to(partial, out_ref.shape)


def _tpu_vmem_capacity_bytes():
    """Physical VMEM per TensorCore; conservative fallback if query fails."""
    try:
        cap = getattr(pltpu.get_tpu_info(), "vmem_capacity_bytes", None)
        if cap:
            return int(cap)
    except Exception:
        pass
    return 64 * 1024 * 1024  # v7x-sized fallback (safe on all generations)


def _pick_tiling(n, c, logits_dtype):
    """Pick (tile_n, vmem_limit_bytes) so inputs + temporaries fit in VMEM."""
    itemsize = jnp.dtype(logits_dtype).itemsize
    packing = 8 * max(1, 4 // itemsize)              # 8 f32 / 16 bf16 / 32 int8
    c_lanes = pl.cdiv(c, 128) * 128                  # lane-padded class dim

    vmem_cap = _tpu_vmem_capacity_bytes()
    # ~48 MiB scoped on 64 MiB parts (v7x), ~96 MiB on 128 MiB parts (v5e/v6e).
    vmem_limit = max(32 * 1024 * 1024,
                     min((vmem_cap * 3) // 4, vmem_cap - 16 * 1024 * 1024))
    tile_budget = vmem_limit - 8 * 1024 * 1024       # headroom: outputs/scratch

    # Per-row VMEM cost:
    #   2x double-buffered inputs: logits row + lane-padded int32 label row
    #   ~4 full-width f32 temporaries (x upcast, exp, where-select, slack)
    #   ~6 lane-padded (TN, 1) f32/i32 vectors (m, lse, ce, pt, poly1, row_id)
    in_row = c_lanes * itemsize + 128 * 4
    tmp_row = 4 * c_lanes * 4 + 6 * 128 * 4
    bytes_per_row = 2 * in_row + tmp_row

    tile_n = tile_budget // bytes_per_row
    tile_n = min(tile_n, _MAX_TILE_N)

    n_ceil = pl.cdiv(max(n, 1), packing) * packing
    tile_n = min(tile_n, n_ceil)                     # don't over-tile tiny inputs

    # v7x: big problem that fits in one step -> split so both TCs get work.
    if n >= 1024 and tile_n >= n:
        half = pl.cdiv(pl.cdiv(n, 2), packing) * packing
        tile_n = min(tile_n, half)

    # Round to the dtype's sublane packing (keeps the BlockSpec legal for
    # bf16/int8); enforce a sane minimum.
    tile_n = max(tile_n, packing)
    tile_n = (tile_n // packing) * packing
    return tile_n, vmem_limit


def poly1_cross_entropy_loss(logits, labels, *, epsilon=1.0, reduction="mean",
                             tile_n=None):
    """Pallas implementation of Poly1CrossEntropyLoss.forward ('mean'/'sum')."""
    if reduction not in ("mean", "sum"):
        # TODO(synk): reduction='none' (per-row output) not implemented.
        raise NotImplementedError("only 'mean' and 'sum' reductions are implemented")

    n, c = logits.shape
    labels2d = labels.astype(jnp.int32).reshape(n, 1)

    auto_tile, vmem_limit = _pick_tiling(n, c, logits.dtype)
    if tile_n is None:
        tile_n = auto_tile
    num_tiles = pl.cdiv(n, tile_n)

    kernel = functools.partial(_poly1_ce_kernel, epsilon=float(epsilon),
                               n_total=n, tile_n=tile_n)

    partials = pl.pallas_call(
        kernel,
        out_shape=jax.ShapeDtypeStruct((num_tiles, 8, 128), jnp.float32),
        grid_spec=pltpu.PrefetchScalarGridSpec(
            num_scalar_prefetch=0,
            grid=(num_tiles,),
            in_specs=[
                pl.BlockSpec((tile_n, c), lambda i: (i, 0)),
                pl.BlockSpec((tile_n, 1), lambda i: (i, 0)),
            ],
            out_specs=pl.BlockSpec((1, 8, 128), lambda i: (i, 0, 0)),
        ),
        compiler_params=pltpu.CompilerParams(
            dimension_semantics=("parallel",),
            vmem_limit_bytes=int(vmem_limit)),
    )(logits, labels2d)

    total = jnp.sum(partials[:, 0, 0])               # one value per tile
    if reduction == "mean":
        return total / jnp.float32(n)
    return total


def _poly1_ce_ref(logits, labels, epsilon=1.0):
    """Pure-JAX reference mirroring the PyTorch module (reduction='mean')."""
    logits = logits.astype(jnp.float32)
    onehot = jax.nn.one_hot(labels, logits.shape[1], dtype=jnp.float32)
    probs = jax.nn.softmax(logits, axis=-1)
    pt = jnp.sum(onehot * probs, axis=-1)
    ce = -jnp.sum(onehot * jax.nn.log_softmax(logits, axis=-1), axis=-1)
    poly1 = ce + epsilon * (1.0 - pt)
    return jnp.mean(poly1)


if __name__ == "__main__":
    key = jax.random.PRNGKey(0)
    k_logits, k_labels = jax.random.split(key)

    N, C = 16, 32  # small, consistent with [N, num_classes] logits / [N] labels
    logits = jax.random.normal(k_logits, (N, C), dtype=jnp.float32)
    labels = jax.random.randint(k_labels, (N,), 0, C, dtype=jnp.int32)

    loss = poly1_cross_entropy_loss(logits, labels, epsilon=1.0,
                                    reduction="mean")
    loss = jax.block_until_ready(loss)

    ref = _poly1_ce_ref(logits, labels, epsilon=1.0)
    assert jnp.allclose(loss, ref, atol=1e-5, rtol=1e-5), (loss, ref)

    print("KERNEL_OK")
</pallas_src>

<mosaic_0001>
module attributes {stable_mosaic.version = 11 : i64} {
  func.func @_poly1_ce_kernel(%arg0: i32, %arg1: memref<16x32xf32, #tpu.memory_space<vmem>>, %arg2: memref<16x1xi32, #tpu.memory_space<vmem>>, %arg3: memref<1x8x128xf32, #tpu.memory_space<vmem>>) attributes {dimension_semantics = [#tpu.dimension_semantics<parallel>], iteration_bounds = array<i64: 1>, scalar_prefetch = 0 : i64, scratch_operands = 0 : i64, tpu.core_type = #tpu.core_type<tc>, window_params = [{transform_indices = @transform_0, window_bounds = array<i64: 16, 32>}, {transform_indices = @transform_1, window_bounds = array<i64: 16, 1>}, {transform_indices = @transform_2, window_bounds = array<i64: 1, 8, 128>}]} {
    %c0 = arith.constant 0 : index
    %c0_0 = arith.constant 0 : index
    %0 = vector.load %arg1[%c0, %c0_0] : memref<16x32xf32, #tpu.memory_space<vmem>>, vector<16x32xf32>
    %c0_1 = arith.constant 0 : index
    %c0_2 = arith.constant 0 : index
    %1 = vector.load %arg2[%c0_1, %c0_2] : memref<16x1xi32, #tpu.memory_space<vmem>>, vector<16x1xi32>
    %cst = arith.constant dense<0xFF800000> : vector<16xf32>
    %2 = vector.multi_reduction <maximumf>, %0, %cst [1] : vector<16x32xf32> to vector<16xf32>
    %3 = vector.shape_cast %2 : vector<16xf32> to vector<16x1xf32>
    %4 = vector.broadcast %3 : vector<16x1xf32> to vector<16x32xf32>
    %5 = arith.subf %0, %4 : vector<16x32xf32>
    %6 = math.exp %5 : vector<16x32xf32>
    %cst_3 = arith.constant dense<0.000000e+00> : vector<16xf32>
    %7 = vector.multi_reduction <add>, %6, %cst_3 [1] : vector<16x32xf32> to vector<16xf32>
    %8 = vector.shape_cast %7 : vector<16xf32> to vector<16x1xf32>
    %9 = math.log %8 : vector<16x1xf32>
    %10 = arith.addf %3, %9 : vector<16x1xf32>
    %11 = tpu.iota {dimensions = array<i32: 1>} : vector<16x32xi32>
    %12 = vector.broadcast %1 : vector<16x1xi32> to vector<16x32xi32>
    %13 = arith.cmpi eq, %11, %12 : vector<16x32xi32>
    %cst_4 = arith.constant 0.000000e+00 : f32
    %14 = vector.broadcast %cst_4 : f32 to vector<16x32xf32>
    %15 = arith.select %13, %0, %14 : vector<16x32xi1>, vector<16x32xf32>
    %cst_5 = arith.constant dense<0.000000e+00> : vector<16xf32>
    %16 = vector.multi_reduction <add>, %15, %cst_5 [1] : vector<16x32xf32> to vector<16xf32>
    %17 = vector.shape_cast %16 : vector<16xf32> to vector<16x1xf32>
    %18 = arith.subf %10, %17 : vector<16x1xf32>
    %cst_6 = arith.constant 0.000000e+00 : f32
    %19 = vector.broadcast %cst_6 : f32 to vector<16x1xf32>
    %20 = arith.subf %19, %18 : vector<16x1xf32>
    %21 = math.exp %20 : vector<16x1xf32>
    %cst_7 = arith.constant 1.000000e+00 : f32
    %22 = vector.broadcast %cst_7 : f32 to vector<16x1xf32>
    %23 = arith.subf %22, %21 : vector<16x1xf32>
    %cst_8 = arith.constant 1.000000e+00 : f32
    %24 = vector.broadcast %cst_8 : f32 to vector<16x1xf32>
    %25 = arith.mulf %24, %23 : vector<16x1xf32>
    %26 = arith.addf %18, %25 : vector<16x1xf32>
    %c16_i32 = arith.constant 16 : i32
    %27 = arith.muli %arg0, %c16_i32 : i32
    %28 = tpu.iota {dimensions = array<i32: 0>} : vector<16x1xi32>
    %29 = vector.broadcast %27 : i32 to vector<16x1xi32>
    %30 = arith.addi %29, %28 : vector<16x1xi32>
    %c16_i32_9 = arith.constant 16 : i32
    %31 = vector.broadcast %c16_i32_9 : i32 to vector<16x1xi32>
    %32 = arith.cmpi slt, %30, %31 : vector<16x1xi32>
    %cst_10 = arith.constant 0.000000e+00 : f32
    %33 = vector.broadcast %cst_10 : f32 to vector<16x1xf32>
    %34 = arith.select %32, %26, %33 : vector<16x1xi1>, vector<16x1xf32>
    %35 = vector.shape_cast %34 : vector<16x1xf32> to vector<1x16x1xf32>
    %cst_11 = arith.constant dense<0.000000e+00> : vector<1xf32>
    %36 = vector.multi_reduction <add>, %35, %cst_11 [1, 2] : vector<1x16x1xf32> to vector<1xf32>
    %37 = vector.shape_cast %36 : vector<1xf32> to vector<1x1x1xf32>
    %38 = vector.extract %37[0, 0, 0] : f32 from vector<1x1x1xf32>
    %39 = vector.broadcast %38 : f32 to vector<1x8x128xf32>
    %c0_12 = arith.constant 0 : index
    %c0_13 = arith.constant 0 : index
    %c0_14 = arith.constant 0 : index
    %40 = vector.load %arg3[%c0_12, %c0_13, %c0_14] : memref<1x8x128xf32, #tpu.memory_space<vmem>>, vector<1x8x128xf32>
    tpu.vector_store %arg3[%c0_12, %c0_13, %c0_14], %39 {strides = array<i32>} : memref<1x8x128xf32, #tpu.memory_space<vmem>>, vector<1x8x128xf32>,
    return
  }
  func.func @transform_0(%arg0: i32) -> (i32, i32) {
    %c0_i32 = arith.constant 0 : i32
    %c0_i32_0 = arith.constant 0 : i32
    return %arg0, %c0_i32 : i32, i32
  }
  func.func @transform_1(%arg0: i32) -> (i32, i32) {
    %c0_i32 = arith.constant 0 : i32
    %c0_i32_0 = arith.constant 0 : i32
    return %arg0, %c0_i32 : i32, i32
  }
  func.func @transform_2(%arg0: i32) -> (i32, i32, i32) {
    %c0_i32 = arith.constant 0 : i32
    %c0_i32_0 = arith.constant 0 : i32
    %c0_i32_1 = arith.constant 0 : i32
    return %arg0, %c0_i32, %c0_i32_0 : i32, i32, i32
  }
}

</mosaic_0001>

<bundles_post_ra>
// kernel: tpu_custom_call.1
= control target key start
LH: loop header
LB: loop body
LE: loop exit
PB: predicated region body
PF: predicated region fallthrough
CT: control target
= control target key end

     0   :  { %vm16_vm0 = vcmask 261120   ;;  %v151_v4 = vmov 0   ;;  %s189_s0 = inlined_call_operand.vmem [shape: f32[16,32], index: 0, kind: input, shape index: {}]   ;;  %s190_s1 = inlined_call_operand.vmem [shape: s32[16,1], index: 1, kind: input, shape index: {}]   ;;  %s191_s2 = inlined_call_operand.hbm [shape: f32[1,8,128], index: 2, kind: output, shape index: {}]  }
   0x1   :  { %v12_v0 = vld [vmem:[%s189_s0] sm:$0xff]  ;;  %v13_v1 = vld [vmem:[%s189_s0 + $0x8] sm:$0xff]  ;;  %115 = vset.pattern.permute.xlu1 %v151_v4  ;;  %116 = vset.pattern.permute.xlu0 %v151_v4 }
   0x2   :  { %v14_v2 = vld [vmem:[%s190_s1] sm:$0xff]  ;;  %v17_v3 = vsel %vm16_vm0, %v12_v0, -inf }
   0x3   :  { %7 = vsyncpa [#allocation3], 0  ;;  %18 = vmax.xlane.f32.xlu0 %v17_v3  ;;  %44 = vperm.xlu1 %115, %v14_v2   ;;  %v20_v5 = vsel %vm16_vm0, %v13_v1, -inf  ;;  %v15_v6 = vld [vmem:[%s190_s1 + $0x8] sm:$0xff]  ;;  %v41_v13 = vlaneseq  ;;  %vm82_vm3 = vcmask 7168   ;;  %s152_s0 = smov [#allocation2]  }
   0x4   :  { %s103_s1 = sshll.u32 %s152_s0, 4  ;;  %s104_s1 = int_to_ptr.vmem [resolvable:$true] %s103_s1 }
   0x5   :  { %v42_v15 = vand.u32 127, %v41_v13  ;;  %s129_s18 = scalar_lea.vmem %s104_s1, 128  ;;  %p134_p1 = scmp.lt.s32.totalorder %s104_s1, %s104_s1 }
   0x6   :  { %p130_p0 = scmp.ne.s32.totalorder %s104_s1, %s129_s18  ;;  %p135_p2 = scmp.lt.s32.totalorder %s129_s18, %s129_s18 }
   0x7   :  { %21 = vmax.xlane.f32.xlu0 %v20_v5  ;;  %47 = vperm.xlu1 %115, %v15_v6  }
   0x8   :  { %p136_p3 = por %p135_p2, %p134_p1 }
   0xa   :  { %p137_p4 = pnand %p136_p3, %p130_p0 }
  0x7e   :  { %v45_v14 = vpop.permute.xlu1 %44 }
  0x7f   :  { %vm49_vm1 = vcmp.eq.s32.totalorder %v42_v15, %v45_v14 }
  0x80   :  { %v51_v18 = vsel %vm49_vm1, %v12_v0, 0.0 }
  0x81   :  { %v53_v20 = vsel %vm16_vm0, %v51_v18, 0.0 }
  0x82   :  { %v48_v16 = vpop.permute.xlu1 %47 }
  0x83   :  { %vm50_vm2 = vcmp.eq.s32.totalorder %v42_v15, %v48_v16 }
  0x84   :  { %v52_v22 = vsel %vm50_vm2, %v13_v1, 0.0 }
  0x85   :  { %v56_v24 = vsel %vm16_vm0, %v52_v22, 0.0 }
  0x8c   :  { %v19_v7 = vpop.xlane.xlu0 %18 }
  0x8d   :  { %v23_v8 = vsub.f32 %v12_v0, %v19_v7 }
  0x8f   :  { %v25_v9 = vmul.f32 1.442695, %v23_v8 }
  0x90   :  { %v22_v10 = vpop.xlane.xlu0 %21 }
  0x91   :  { %117 = vpow2.f32 %v25_v9  ;;  %v24_v11 = vsub.f32 %v13_v1, %v22_v10 }
  0x93   :  { %v27_v12 = vmul.f32 1.442695, %v24_v11 }
  0x95   :  { %119 = vpow2.f32 %v27_v12 }
  0x9e   :  { %v118_v17 = vpop.eup %117 }
  0x9f   :  { %v29_v19 = vsel %vm16_vm0, %v118_v17, 0.0 }
  0xa0   :  { %30 = vadd.xlane.f32.xlu0 %v29_v19 }
  0xa2   :  { %v120_v21 = vpop.eup %119 }
  0xa3   :  { %v32_v23 = vsel %vm16_vm0, %v120_v21, 0.0 }
  0xa4   :  { %33 = vadd.xlane.f32.xlu1 %v32_v23  ;;  %54 = vadd.xlane.f32.xlu0 %v53_v20 }
  0xa8   :  { %57 = vadd.xlane.f32.xlu0 %v56_v24 }
 0x129   :  { %v31_v25 = vpop.xlane.xlu0 %30 }
 0x12a   :  { %121 = vlog2.f32 %v31_v25 }
 0x12d   :  { %v34_v26 = vpop.xlane.xlu1 %33  ;;  %v55_v29 = vpop.xlane.xlu0 %54 }
 0x12e   :  { %123 = vlog2.f32 %v34_v26 }
 0x131   :  { %v58_v36 = vpop.xlane.xlu0 %57 }
 0x137   :  { %v122_v27 = vpop.eup %121 }
 0x138   :  { %v36_v28 = vmul.f32 0.6931472, %v122_v27 }
 0x13a   :  { %v39_v30 = vadd.f32 %v36_v28, %v19_v7 }
 0x13b   :  { %v124_v31 = vpop.eup %123 }
 0x13c   :  { %v38_v32 = vmul.f32 0.6931472, %v124_v31  ;;  %v59_v33 = vsub.f32 %v39_v30, %v55_v29 }
 0x13e   :  { %v61_v34 = vsub.f32 0.0, %v59_v33  ;;  %v40_v35 = vadd.f32 %v38_v32, %v22_v10 }
 0x140   :  { %v63_v37 = vmul.f32 1.442695, %v61_v34  ;;  %v60_v38 = vsub.f32 %v40_v35, %v58_v36 }
 0x142   :  { %125 = vpow2.f32 %v63_v37  ;;  %v62_v39 = vsub.f32 0.0, %v60_v38 }
 0x144   :  { %v65_v40 = vmul.f32 1.442695, %v62_v39 }
 0x146   :  { %127 = vpow2.f32 %v65_v40 }
 0x14f   :  { %v126_v41 = vpop.eup %125 }
 0x150   :  { %v67_v42 = vsub.f32 1.0, %v126_v41 }
 0x152   :  { %v69_v44 = vadd.f32 %v67_v42, %v59_v33 }
 0x153   :  { %v128_v43 = vpop.eup %127 }
 0x154   :  { %v68_v45 = vsub.f32 1.0, %v128_v43  ;;  %v83_v47 = vsel %vm82_vm3, %v69_v44, 0.0 }
 0x156   :  { %v70_v46 = vadd.f32 %v68_v45, %v60_v38 }
 0x158   :  { %v84_v48 = vsel %vm82_vm3, %v70_v46, 0.0 }
 0x159   :  { %v85_v49 = vadd.f32 %v84_v48, %v83_v47 }
 0x15b   :  { %86 = vadd.xlane.f32.xlu0 %v85_v49 }
 0x1e4   :  { %v87_v50 = vpop.xlane.xlu0 %86 }
 0x1e5   :  { %v88_v51 = vrot.slane %v87_v50, 4 }
 0x1e7   :  { %v89_v52 = vadd.f32 %v88_v51, %v87_v50 }
 0x1e9   :  { %v90_v53 = vrot.slane %v89_v52, 2 }
 0x1eb   :  { %v91_v54 = vadd.f32 %v90_v53, %v89_v52 }
 0x1ed   :  { %v92_v55 = vrot.slane %v91_v54, 1 }
 0x1ef   :  { %v93_v56 = vadd.f32 %v92_v55, %v91_v54 }
 0x1f1   :  { %111 = vpush %v93_v56 }
 0x222   :  { %s112_s17 = spop %111 }
 0x223   :  { %v95_v57 = vstv %s112_s17 }
 0x224   :  { %96 = vst [vmem:[#allocation2] sm:$0xff] %v95_v57 }
 0x225   :  { %140 = shalt.err (!%p137_p4)
}
 0x226   :  { %106 = dma.vmem_to_hbm [thread:$0]  %s104_s1, 128, %s191_s2, [#allocation3]  }
 0x227   :  { %149 = dma.done.wait [#allocation3], 128  }
 0x228   :  { %150 = vsyncadd [#allocation3], 4294967168 }
 0x229   :  { %110 = vsyncpa [#allocation3], 1 }

</bundles_post_ra>
